<compile_context>
chip_gen: v7x
topology: tpu7x:2x2x1
jax: 0.10.0
libtpu: 0.0.40
codegen_flags: <defaults>
</compile_context>

<pallas_src>
import functools
import math

import jax
import jax.numpy as jnp
from jax.experimental import pallas as pl
from jax.experimental.pallas import tpu as pltpu


def _round_up(x: int, m: int) -> int:
    return ((x + m - 1) // m) * m


def _pad_axis(a, axis, new_size):
    if a.shape[axis] == new_size:
        return a
    pads = [(0, 0)] * a.ndim
    pads[axis] = (0, new_size - a.shape[axis])
    return jnp.pad(a, pads)


def _pick_sample_tile(n_samples: int, bytes_per_sample: int) -> int:
    """Largest divisor of n_samples whose double-buffered per-step footprint stays under a
    conservative VMEM budget, preferring >=2 grid steps so the 'parallel' axis can feed both
    TensorCores on v7x (harmless no-op on single-TC v5e/v6e)."""
    budget = 8 * 1024 * 1024
    st = max(1, min(n_samples, budget // max(1, 2 * bytes_per_sample)))
    while n_samples % st:
        st -= 1
    if st == n_samples and n_samples >= 2:
        for div in range(2, n_samples + 1):
            if n_samples % div == 0:
                st = n_samples // div
                break
    return st


def _sparse_bnn_kernel(x_ref, w_in_ref, b_in_ref, w_res_ref, b_res_ref,
                       w_out_ref, b_out_ref, o_ref, *, n_res):
    """One grid step = full SparseBNN forward for St reparameterization samples.

    Block shapes (all zero-padded to lane/sublane multiples):
      x_ref:     (1, Bp, Inp)   shared network input, resident across the grid
      w_in_ref:  (St, Hp, Inp)  b_in_ref:  (St, 1, Hp)
      w_res_ref: (St, Hp, Hp)   b_res_ref: (St, 1, Hp)    (shared residual module weights)
      w_out_ref: (St, Op, Hp)   b_out_ref: (St, 1, Op)
      o_ref:     (St, Bp, Op)
    """
    st = w_in_ref.shape[0]
    x = x_ref[0]                                         # load the shared block once per step
    dn = (((1,), (1,)), ((), ()))                        # contract feature (lane) axes: x @ w.T

    # Short static loop over the samples in this tile: each matmul is a plain 2-D MXU op.
    for i in range(st):
        # Layer 0: BayesianLinear(in -> hidden), ReLU.
        h = jax.lax.dot_general(x, w_in_ref[i], dn, preferred_element_type=jnp.float32)
        h = jnp.maximum(h + b_in_ref[i].astype(jnp.float32), 0.0)   # (Bp, Hp)
        # (n_layers - 1) x BayesianResidual(hidden), ReLU: relu(h @ w.T + b) + h.
        for _ in range(n_res):
            y = jax.lax.dot_general(h, w_res_ref[i], dn, preferred_element_type=jnp.float32)
            h = jnp.maximum(y + b_res_ref[i].astype(jnp.float32), 0.0) + h
        # Output layer: BayesianLinear(hidden -> out), Identity.
        y = jax.lax.dot_general(h, w_out_ref[i], dn, preferred_element_type=jnp.float32)
        o_ref[i] = (y + b_out_ref[i].astype(jnp.float32)).astype(o_ref.dtype)


@functools.partial(jax.jit, static_argnames=("n_layers",))
def sparse_bnn_forward(x, w_in, b_in, w_res, b_res, w_out, b_out, *, n_layers):
    """SparseBNN forward.

    x:     (B, in_features)                    shared across reparam samples
    w_in:  (S, n_hidden, in_features)          b_in:  (S, n_hidden)
    w_res: (S, n_hidden, n_hidden)             b_res: (S, n_hidden)   (one shared residual module)
    w_out: (S, out_features, n_hidden)         b_out: (S, out_features)
    Returns (S, B, out_features).
    """
    S, H, In = w_in.shape
    Out = w_out.shape[1]
    B = x.shape[0]
    n_res = n_layers - 1

    Inp, Hp, Op = _round_up(In, 128), _round_up(H, 128), _round_up(Out, 128)
    Bp = _round_up(B, 8)

    # Pad once; zero padding keeps ReLU / residual / matmul exact on the padded lanes.
    xp = _pad_axis(_pad_axis(x, 1, Inp), 0, Bp)[None]            # (1, Bp, Inp)
    w_in_p = _pad_axis(_pad_axis(w_in, 2, Inp), 1, Hp)           # (S, Hp, Inp)
    b_in_p = _pad_axis(b_in, 1, Hp)[:, None, :]                  # (S, 1, Hp)
    w_res_p = _pad_axis(_pad_axis(w_res, 2, Hp), 1, Hp)          # (S, Hp, Hp)
    b_res_p = _pad_axis(b_res, 1, Hp)[:, None, :]                # (S, 1, Hp)
    w_out_p = _pad_axis(_pad_axis(w_out, 2, Hp), 1, Op)          # (S, Op, Hp)
    b_out_p = _pad_axis(b_out, 1, Op)[:, None, :]                # (S, 1, Op)

    per_sample_bytes = 4 * (Hp * Inp + Hp * Hp + Op * Hp + Bp * Op + 2 * Hp + Op)
    St = _pick_sample_tile(S, per_sample_bytes)

    kernel = functools.partial(_sparse_bnn_kernel, n_res=n_res)

    out = pl.pallas_call(
        kernel,
        out_shape=jax.ShapeDtypeStruct((S, Bp, Op), x.dtype),
        grid_spec=pltpu.PrefetchScalarGridSpec(
            num_scalar_prefetch=0,
            grid=(S // St,),                                      # one step per tile of samples
            in_specs=[
                pl.BlockSpec((1, Bp, Inp), lambda s: (0, 0, 0)),  # shared x: resident in VMEM
                pl.BlockSpec((St, Hp, Inp), lambda s: (s, 0, 0)),
                pl.BlockSpec((St, 1, Hp), lambda s: (s, 0, 0)),
                pl.BlockSpec((St, Hp, Hp), lambda s: (s, 0, 0)),
                pl.BlockSpec((St, 1, Hp), lambda s: (s, 0, 0)),
                pl.BlockSpec((St, Op, Hp), lambda s: (s, 0, 0)),
                pl.BlockSpec((St, 1, Op), lambda s: (s, 0, 0)),
            ],
            out_specs=pl.BlockSpec((St, Bp, Op), lambda s: (s, 0, 0)),
        ),
        compiler_params=pltpu.CompilerParams(
            dimension_semantics=("parallel",),
            vmem_limit_bytes=32 * 1024 * 1024,
        ),
    )(xp, w_in_p, b_in_p, w_res_p, b_res_p, w_out_p, b_out_p)

    return out[:, :B, :Out]


def init_layer_params(key, in_features, out_features, n_reparam):
    """Synthetic stand-in for SVIHalfCauchyPrior.get_reparam_weights(n): kaiming-uniform
    (a=sqrt(5)) mean for w, fan-in-bound uniform mean for b, plus small per-sample noise.
    Returns w: (S, Out, In), b: (S, Out)."""
    k_w, k_b, k_eps = jax.random.split(key, 3)
    bound = 1.0 / math.sqrt(in_features)
    w_mean = jax.random.uniform(k_w, (out_features, in_features), jnp.float32, -bound, bound)
    b_mean = jax.random.uniform(k_b, (out_features,), jnp.float32, -bound, bound)
    d = in_features * out_features + out_features
    eps = jax.random.normal(k_eps, (n_reparam, d), jnp.float32)
    # TODO(synk): the real per-sample scales come from the half-Cauchy variational posterior
    # (log-normal scales); a fixed small sigma stands in for this forward-only test.
    sigma = 0.05
    wtilde = jnp.concatenate([w_mean.reshape(-1), b_mean])[None, :] + sigma * eps
    w = wtilde[:, : in_features * out_features].reshape(n_reparam, out_features, in_features)
    b = wtilde[:, in_features * out_features:]
    return w, b


def sparse_bnn_reference(x, w_in, b_in, w_res, b_res, w_out, b_out, n_layers):
    """Pure-JAX reference matching the PyTorch SparseBNN forward."""
    S = w_in.shape[0]
    h = jnp.broadcast_to(x[None], (S,) + x.shape)
    h = jax.nn.relu(jnp.einsum("sbk,sok->sbo", h, w_in) + b_in[:, None, :])
    for _ in range(n_layers - 1):
        h = jax.nn.relu(jnp.einsum("sbk,sok->sbo", h, w_res) + b_res[:, None, :]) + h
    return jnp.einsum("sbk,sok->sbo", h, w_out) + b_out[:, None, :]


if __name__ == "__main__":
    in_features, n_hidden, out_features = 16, 32, 8
    n_layers, n_reparam, batch = 3, 4, 8

    key = jax.random.PRNGKey(0)
    k_x, k0, kr, kl = jax.random.split(key, 4)
    x = jax.random.normal(k_x, (batch, in_features), jnp.float32)

    # SparseBNN layer list: Linear(in->hidden, ReLU), (n_layers-1) x Residual(hidden, ReLU)
    # (PyTorch reuses the SAME residual module object), Linear(hidden->out, Identity).
    w_in, b_in = init_layer_params(k0, in_features, n_hidden, n_reparam)
    w_res, b_res = init_layer_params(kr, n_hidden, n_hidden, n_reparam)
    w_out, b_out = init_layer_params(kl, n_hidden, out_features, n_reparam)

    out = jax.block_until_ready(
        sparse_bnn_forward(x, w_in, b_in, w_res, b_res, w_out, b_out, n_layers=n_layers))

    ref = sparse_bnn_reference(x, w_in, b_in, w_res, b_res, w_out, b_out, n_layers)
    assert out.shape == (n_reparam, batch, out_features)
    max_err = float(jnp.max(jnp.abs(out - ref)))
    assert jnp.allclose(out, ref, atol=1e-4, rtol=1e-4), f"max abs err {max_err}"
    print("KERNEL_OK")
</pallas_src>

<mosaic_0001>
module attributes {stable_mosaic.version = 11 : i64} {
  func.func @_sparse_bnn_kernel(%arg0: i32, %arg1: memref<1x8x128xf32, #tpu.memory_space<vmem>>, %arg2: memref<2x128x128xf32, #tpu.memory_space<vmem>>, %arg3: memref<2x1x128xf32, #tpu.memory_space<vmem>>, %arg4: memref<2x128x128xf32, #tpu.memory_space<vmem>>, %arg5: memref<2x1x128xf32, #tpu.memory_space<vmem>>, %arg6: memref<2x128x128xf32, #tpu.memory_space<vmem>>, %arg7: memref<2x1x128xf32, #tpu.memory_space<vmem>>, %arg8: memref<2x8x128xf32, #tpu.memory_space<vmem>>) attributes {dimension_semantics = [#tpu.dimension_semantics<parallel>], iteration_bounds = array<i64: 2>, scalar_prefetch = 0 : i64, scratch_operands = 0 : i64, tpu.core_type = #tpu.core_type<tc>, window_params = [{pipeline_mode = #tpu.pipeline_mode<synchronous>, transform_indices = @transform_0, window_bounds = array<i64: 1, 8, 128>}, {transform_indices = @transform_1, window_bounds = array<i64: 2, 128, 128>}, {transform_indices = @transform_2, window_bounds = array<i64: 2, 1, 128>}, {transform_indices = @transform_3, window_bounds = array<i64: 2, 128, 128>}, {transform_indices = @transform_4, window_bounds = array<i64: 2, 1, 128>}, {transform_indices = @transform_5, window_bounds = array<i64: 2, 128, 128>}, {transform_indices = @transform_6, window_bounds = array<i64: 2, 1, 128>}, {transform_indices = @transform_7, window_bounds = array<i64: 2, 8, 128>}]} {
    %c0 = arith.constant 0 : index
    %c0_0 = arith.constant 0 : index
    %c0_1 = arith.constant 0 : index
    %0 = vector.load %arg1[%c0, %c0_0, %c0_1] : memref<1x8x128xf32, #tpu.memory_space<vmem>>, vector<1x8x128xf32>
    %1 = vector.shape_cast %0 : vector<1x8x128xf32> to vector<8x128xf32>
    %c0_2 = arith.constant 0 : index
    %c0_3 = arith.constant 0 : index
    %c0_4 = arith.constant 0 : index
    %2 = vector.load %arg2[%c0_2, %c0_3, %c0_4] : memref<2x128x128xf32, #tpu.memory_space<vmem>>, vector<1x128x128xf32>
    %3 = vector.shape_cast %2 : vector<1x128x128xf32> to vector<128x128xf32>
    %cst = arith.constant dense<0.000000e+00> : vector<8x128xf32>
    %4 = tpu.matmul %1, %3, %cst {dimension_numbers = #tpu.dot_dimension_numbers<[1], [1], [0], [0], [0, 0, 1, 0], [], []>} : vector<8x128xf32>, vector<128x128xf32>, vector<8x128xf32> -> vector<8x128xf32>
    %c0_5 = arith.constant 0 : index
    %c0_6 = arith.constant 0 : index
    %c0_7 = arith.constant 0 : index
    %5 = vector.load %arg3[%c0_5, %c0_6, %c0_7] : memref<2x1x128xf32, #tpu.memory_space<vmem>>, vector<1x1x128xf32>
    %6 = vector.shape_cast %5 : vector<1x1x128xf32> to vector<1x128xf32>
    %7 = vector.broadcast %6 : vector<1x128xf32> to vector<8x128xf32>
    %8 = arith.addf %4, %7 : vector<8x128xf32>
    %cst_8 = arith.constant 0.000000e+00 : f32
    %9 = vector.broadcast %cst_8 : f32 to vector<8x128xf32>
    %10 = arith.maximumf %8, %9 : vector<8x128xf32>
    %c0_9 = arith.constant 0 : index
    %c0_10 = arith.constant 0 : index
    %c0_11 = arith.constant 0 : index
    %11 = vector.load %arg4[%c0_9, %c0_10, %c0_11] : memref<2x128x128xf32, #tpu.memory_space<vmem>>, vector<1x128x128xf32>
    %12 = vector.shape_cast %11 : vector<1x128x128xf32> to vector<128x128xf32>
    %cst_12 = arith.constant dense<0.000000e+00> : vector<8x128xf32>
    %13 = tpu.matmul %10, %12, %cst_12 {dimension_numbers = #tpu.dot_dimension_numbers<[1], [1], [0], [0], [0, 0, 1, 0], [], []>} : vector<8x128xf32>, vector<128x128xf32>, vector<8x128xf32> -> vector<8x128xf32>
    %c0_13 = arith.constant 0 : index
    %c0_14 = arith.constant 0 : index
    %c0_15 = arith.constant 0 : index
    %14 = vector.load %arg5[%c0_13, %c0_14, %c0_15] : memref<2x1x128xf32, #tpu.memory_space<vmem>>, vector<1x1x128xf32>
    %15 = vector.shape_cast %14 : vector<1x1x128xf32> to vector<1x128xf32>
    %16 = vector.broadcast %15 : vector<1x128xf32> to vector<8x128xf32>
    %17 = arith.addf %13, %16 : vector<8x128xf32>
    %cst_16 = arith.constant 0.000000e+00 : f32
    %18 = vector.broadcast %cst_16 : f32 to vector<8x128xf32>
    %19 = arith.maximumf %17, %18 : vector<8x128xf32>
    %20 = arith.addf %19, %10 : vector<8x128xf32>
    %c0_17 = arith.constant 0 : index
    %c0_18 = arith.constant 0 : index
    %c0_19 = arith.constant 0 : index
    %21 = vector.load %arg4[%c0_17, %c0_18, %c0_19] : memref<2x128x128xf32, #tpu.memory_space<vmem>>, vector<1x128x128xf32>
    %22 = vector.shape_cast %21 : vector<1x128x128xf32> to vector<128x128xf32>
    %cst_20 = arith.constant dense<0.000000e+00> : vector<8x128xf32>
    %23 = tpu.matmul %20, %22, %cst_20 {dimension_numbers = #tpu.dot_dimension_numbers<[1], [1], [0], [0], [0, 0, 1, 0], [], []>} : vector<8x128xf32>, vector<128x128xf32>, vector<8x128xf32> -> vector<8x128xf32>
    %c0_21 = arith.constant 0 : index
    %c0_22 = arith.constant 0 : index
    %c0_23 = arith.constant 0 : index
    %24 = vector.load %arg5[%c0_21, %c0_22, %c0_23] : memref<2x1x128xf32, #tpu.memory_space<vmem>>, vector<1x1x128xf32>
    %25 = vector.shape_cast %24 : vector<1x1x128xf32> to vector<1x128xf32>
    %26 = vector.broadcast %25 : vector<1x128xf32> to vector<8x128xf32>
    %27 = arith.addf %23, %26 : vector<8x128xf32>
    %cst_24 = arith.constant 0.000000e+00 : f32
    %28 = vector.broadcast %cst_24 : f32 to vector<8x128xf32>
    %29 = arith.maximumf %27, %28 : vector<8x128xf32>
    %30 = arith.addf %29, %20 : vector<8x128xf32>
    %c0_25 = arith.constant 0 : index
    %c0_26 = arith.constant 0 : index
    %c0_27 = arith.constant 0 : index
    %31 = vector.load %arg6[%c0_25, %c0_26, %c0_27] : memref<2x128x128xf32, #tpu.memory_space<vmem>>, vector<1x128x128xf32>
    %32 = vector.shape_cast %31 : vector<1x128x128xf32> to vector<128x128xf32>
    %cst_28 = arith.constant dense<0.000000e+00> : vector<8x128xf32>
    %33 = tpu.matmul %30, %32, %cst_28 {dimension_numbers = #tpu.dot_dimension_numbers<[1], [1], [0], [0], [0, 0, 1, 0], [], []>} : vector<8x128xf32>, vector<128x128xf32>, vector<8x128xf32> -> vector<8x128xf32>
    %c0_29 = arith.constant 0 : index
    %c0_30 = arith.constant 0 : index
    %c0_31 = arith.constant 0 : index
    %34 = vector.load %arg7[%c0_29, %c0_30, %c0_31] : memref<2x1x128xf32, #tpu.memory_space<vmem>>, vector<1x1x128xf32>
    %35 = vector.shape_cast %34 : vector<1x1x128xf32> to vector<1x128xf32>
    %36 = vector.broadcast %35 : vector<1x128xf32> to vector<8x128xf32>
    %37 = arith.addf %33, %36 : vector<8x128xf32>
    %c0_32 = arith.constant 0 : index
    %c0_33 = arith.constant 0 : index
    %c0_34 = arith.constant 0 : index
    %38 = vector.load %arg8[%c0_32, %c0_33, %c0_34] : memref<2x8x128xf32, #tpu.memory_space<vmem>>, vector<1x8x128xf32>
    %39 = vector.shape_cast %38 : vector<1x8x128xf32> to vector<8x128xf32>
    %40 = vector.shape_cast %37 : vector<8x128xf32> to vector<1x8x128xf32>
    tpu.vector_store %arg8[%c0_32, %c0_33, %c0_34], %40 {strides = array<i32>} : memref<2x8x128xf32, #tpu.memory_space<vmem>>, vector<1x8x128xf32>,
    %c1 = arith.constant 1 : index
    %c0_35 = arith.constant 0 : index
    %c0_36 = arith.constant 0 : index
    %41 = vector.load %arg2[%c1, %c0_35, %c0_36] : memref<2x128x128xf32, #tpu.memory_space<vmem>>, vector<1x128x128xf32>
    %42 = vector.shape_cast %41 : vector<1x128x128xf32> to vector<128x128xf32>
    %cst_37 = arith.constant dense<0.000000e+00> : vector<8x128xf32>
    %43 = tpu.matmul %1, %42, %cst_37 {dimension_numbers = #tpu.dot_dimension_numbers<[1], [1], [0], [0], [0, 0, 1, 0], [], []>} : vector<8x128xf32>, vector<128x128xf32>, vector<8x128xf32> -> vector<8x128xf32>
    %c1_38 = arith.constant 1 : index
    %c0_39 = arith.constant 0 : index
    %c0_40 = arith.constant 0 : index
    %44 = vector.load %arg3[%c1_38, %c0_39, %c0_40] : memref<2x1x128xf32, #tpu.memory_space<vmem>>, vector<1x1x128xf32>
    %45 = vector.shape_cast %44 : vector<1x1x128xf32> to vector<1x128xf32>
    %46 = vector.broadcast %45 : vector<1x128xf32> to vector<8x128xf32>
    %47 = arith.addf %43, %46 : vector<8x128xf32>
    %cst_41 = arith.constant 0.000000e+00 : f32
    %48 = vector.broadcast %cst_41 : f32 to vector<8x128xf32>
    %49 = arith.maximumf %47, %48 : vector<8x128xf32>
    %c1_42 = arith.constant 1 : index
    %c0_43 = arith.constant 0 : index
    %c0_44 = arith.constant 0 : index
    %50 = vector.load %arg4[%c1_42, %c0_43, %c0_44] : memref<2x128x128xf32, #tpu.memory_space<vmem>>, vector<1x128x128xf32>
    %51 = vector.shape_cast %50 : vector<1x128x128xf32> to vector<128x128xf32>
    %cst_45 = arith.constant dense<0.000000e+00> : vector<8x128xf32>
    %52 = tpu.matmul %49, %51, %cst_45 {dimension_numbers = #tpu.dot_dimension_numbers<[1], [1], [0], [0], [0, 0, 1, 0], [], []>} : vector<8x128xf32>, vector<128x128xf32>, vector<8x128xf32> -> vector<8x128xf32>
    %c1_46 = arith.constant 1 : index
    %c0_47 = arith.constant 0 : index
    %c0_48 = arith.constant 0 : index
    %53 = vector.load %arg5[%c1_46, %c0_47, %c0_48] : memref<2x1x128xf32, #tpu.memory_space<vmem>>, vector<1x1x128xf32>
    %54 = vector.shape_cast %53 : vector<1x1x128xf32> to vector<1x128xf32>
    %55 = vector.broadcast %54 : vector<1x128xf32> to vector<8x128xf32>
    %56 = arith.addf %52, %55 : vector<8x128xf32>
    %cst_49 = arith.constant 0.000000e+00 : f32
    %57 = vector.broadcast %cst_49 : f32 to vector<8x128xf32>
    %58 = arith.maximumf %56, %57 : vector<8x128xf32>
    %59 = arith.addf %58, %49 : vector<8x128xf32>
    %c1_50 = arith.constant 1 : index
    %c0_51 = arith.constant 0 : index
    %c0_52 = arith.constant 0 : index
    %60 = vector.load %arg4[%c1_50, %c0_51, %c0_52] : memref<2x128x128xf32, #tpu.memory_space<vmem>>, vector<1x128x128xf32>
    %61 = vector.shape_cast %60 : vector<1x128x128xf32> to vector<128x128xf32>
    %cst_53 = arith.constant dense<0.000000e+00> : vector<8x128xf32>
    %62 = tpu.matmul %59, %61, %cst_53 {dimension_numbers = #tpu.dot_dimension_numbers<[1], [1], [0], [0], [0, 0, 1, 0], [], []>} : vector<8x128xf32>, vector<128x128xf32>, vector<8x128xf32> -> vector<8x128xf32>
    %c1_54 = arith.constant 1 : index
    %c0_55 = arith.constant 0 : index
    %c0_56 = arith.constant 0 : index
    %63 = vector.load %arg5[%c1_54, %c0_55, %c0_56] : memref<2x1x128xf32, #tpu.memory_space<vmem>>, vector<1x1x128xf32>
    %64 = vector.shape_cast %63 : vector<1x1x128xf32> to vector<1x128xf32>
    %65 = vector.broadcast %64 : vector<1x128xf32> to vector<8x128xf32>
    %66 = arith.addf %62, %65 : vector<8x128xf32>
    %cst_57 = arith.constant 0.000000e+00 : f32
    %67 = vector.broadcast %cst_57 : f32 to vector<8x128xf32>
    %68 = arith.maximumf %66, %67 : vector<8x128xf32>
    %69 = arith.addf %68, %59 : vector<8x128xf32>
    %c1_58 = arith.constant 1 : index
    %c0_59 = arith.constant 0 : index
    %c0_60 = arith.constant 0 : index
    %70 = vector.load %arg6[%c1_58, %c0_59, %c0_60] : memref<2x128x128xf32, #tpu.memory_space<vmem>>, vector<1x128x128xf32>
    %71 = vector.shape_cast %70 : vector<1x128x128xf32> to vector<128x128xf32>
    %cst_61 = arith.constant dense<0.000000e+00> : vector<8x128xf32>
    %72 = tpu.matmul %69, %71, %cst_61 {dimension_numbers = #tpu.dot_dimension_numbers<[1], [1], [0], [0], [0, 0, 1, 0], [], []>} : vector<8x128xf32>, vector<128x128xf32>, vector<8x128xf32> -> vector<8x128xf32>
    %c1_62 = arith.constant 1 : index
    %c0_63 = arith.constant 0 : index
    %c0_64 = arith.constant 0 : index
    %73 = vector.load %arg7[%c1_62, %c0_63, %c0_64] : memref<2x1x128xf32, #tpu.memory_space<vmem>>, vector<1x1x128xf32>
    %74 = vector.shape_cast %73 : vector<1x1x128xf32> to vector<1x128xf32>
    %75 = vector.broadcast %74 : vector<1x128xf32> to vector<8x128xf32>
    %76 = arith.addf %72, %75 : vector<8x128xf32>
    %c1_65 = arith.constant 1 : index
    %c0_66 = arith.constant 0 : index
    %c0_67 = arith.constant 0 : index
    %77 = vector.load %arg8[%c1_65, %c0_66, %c0_67] : memref<2x8x128xf32, #tpu.memory_space<vmem>>, vector<1x8x128xf32>
    %78 = vector.shape_cast %77 : vector<1x8x128xf32> to vector<8x128xf32>
    %79 = vector.shape_cast %76 : vector<8x128xf32> to vector<1x8x128xf32>
    tpu.vector_store %arg8[%c1_65, %c0_66, %c0_67], %79 {strides = array<i32>} : memref<2x8x128xf32, #tpu.memory_space<vmem>>, vector<1x8x128xf32>,
    return
  }
  func.func @transform_0(%arg0: i32) -> (i32, i32, i32) {
    %c0_i32 = arith.constant 0 : i32
    %c0_i32_0 = arith.constant 0 : i32
    %c0_i32_1 = arith.constant 0 : i32
    %c0_i32_2 = arith.constant 0 : i32
    return %c0_i32, %c0_i32_0, %c0_i32_1 : i32, i32, i32
  }
  func.func @transform_1(%arg0: i32) -> (i32, i32, i32) {
    %c0_i32 = arith.constant 0 : i32
    %c0_i32_0 = arith.constant 0 : i32
    %c0_i32_1 = arith.constant 0 : i32
    return %arg0, %c0_i32, %c0_i32_0 : i32, i32, i32
  }
  func.func @transform_2(%arg0: i32) -> (i32, i32, i32) {
    %c0_i32 = arith.constant 0 : i32
    %c0_i32_0 = arith.constant 0 : i32
    %c0_i32_1 = arith.constant 0 : i32
    return %arg0, %c0_i32, %c0_i32_0 : i32, i32, i32
  }
  func.func @transform_3(%arg0: i32) -> (i32, i32, i32) {
    %c0_i32 = arith.constant 0 : i32
    %c0_i32_0 = arith.constant 0 : i32
    %c0_i32_1 = arith.constant 0 : i32
    return %arg0, %c0_i32, %c0_i32_0 : i32, i32, i32
  }
  func.func @transform_4(%arg0: i32) -> (i32, i32, i32) {
    %c0_i32 = arith.constant 0 : i32
    %c0_i32_0 = arith.constant 0 : i32
    %c0_i32_1 = arith.constant 0 : i32
    return %arg0, %c0_i32, %c0_i32_0 : i32, i32, i32
  }
  func.func @transform_5(%arg0: i32) -> (i32, i32, i32) {
    %c0_i32 = arith.constant 0 : i32
    %c0_i32_0 = arith.constant 0 : i32
    %c0_i32_1 = arith.constant 0 : i32
    return %arg0, %c0_i32, %c0_i32_0 : i32, i32, i32
  }
  func.func @transform_6(%arg0: i32) -> (i32, i32, i32) {
    %c0_i32 = arith.constant 0 : i32
    %c0_i32_0 = arith.constant 0 : i32
    %c0_i32_1 = arith.constant 0 : i32
    return %arg0, %c0_i32, %c0_i32_0 : i32, i32, i32
  }
  func.func @transform_7(%arg0: i32) -> (i32, i32, i32) {
    %c0_i32 = arith.constant 0 : i32
    %c0_i32_0 = arith.constant 0 : i32
    %c0_i32_1 = arith.constant 0 : i32
    return %arg0, %c0_i32, %c0_i32_0 : i32, i32, i32
  }
}

</mosaic_0001>

<bundles_post_ra>
// kernel: sparse_bnn_forward.1
= control target key start
LH: loop header
LB: loop body
LE: loop exit
PB: predicated region body
PF: predicated region fallthrough
CT: control target
= control target key end

     0   :  { %12 = vsyncpa [#allocation3], 0  ;;  %s2426_s0 = inlined_call_operand.vmem [shape: f32[1,8,128], index: 0, kind: input, shape index: {}]   ;;  %s2427_s1 = inlined_call_operand.vmem [shape: f32[4,128,128], index: 1, kind: input, shape index: {}]   ;;  %s2428_s2 = inlined_call_operand.vmem [shape: f32[4,1,128], index: 2, kind: input, shape index: {}]   ;;  %s2429_s3 = inlined_call_operand.vmem [shape: f32[4,128,128], index: 3, kind: input, shape index: {}]   ;;  %s2430_s4 = inlined_call_operand.vmem [shape: f32[4,1,128], index: 4, kind: input, shape index: {}]   ;;  %s2431_s5 = inlined_call_operand.vmem [shape: f32[4,128,128], index: 5, kind: input, shape index: {}]   ;;  %s2432_s6 = inlined_call_operand.vmem [shape: f32[4,1,128], index: 6, kind: input, shape index: {}]   ;;  %s2433_s7 = inlined_call_operand.hbm [shape: f32[4,8,128], index: 7, kind: output, shape index: {}]  }
   0x1   :  { %14 = vsyncpa [#allocation3 + $0x1], 0  ;;  %s2081_s24 = smov 0   ;;  %s2083_s25 = smov 0  }
   0x2   :  { %s2085_s26 = smov 0   ;;  %s2087_s27 = smov 0  }
   0x3 LB: > { %s2102_s28 = sadd.s32 4294967295, %s2033_s27   ;;  %s1235_s29 = sadd.s32 4294967294, %s2033_s27   ;;  %s2033_s27 = sphi %s2087_s27, %s2439_s27   ;;  %s2029_s26 = sphi %s2085_s26, %s2438_s26   ;;  %s2025_s25 = sphi %s2083_s25, %s2437_s25   ;;  %s2021_s24 = sphi %s2081_s24, %s2436_s24  }
   0x4   : > { %s2106_s30 = sadd.s32 1, %s2033_s27   ;;  %s204_s8 = sadd.s32 1, %s2029_s26 }
   0x5   : > { %s201_s9 = ssub.s32 %s2033_s27, %s2106_s30  ;;  %p214_p0 = scmp.ne.s32.totalorder %s2029_s26, %s2025_s25 }
   0x6   : > { %p202_p1 = scmp.eq.s32.totalorder %s201_s9, 0  ;;  %p215_p2 = scmp.eq.s32.totalorder %s2102_s28, 1 }
   0x7   : > { %p220_p3 = scmp.ne.s32.totalorder %s2025_s25, %s2021_s24  ;;  %p221_p4 = scmp.eq.s32.totalorder %s1235_s29, 1 }
   0x8   : > { %s2117_s10 = scalar_select %p202_p1, %s2029_s26, %s204_s8  }
   0x9   : > { %p2119_p5 = por %p215_p2, %p214_p0  ;;  %p2123_p6 = por %p221_p4, %p220_p3 }
   0xa   : > { %p1238_p7 = scmp.ge.s32.totalorder %s2033_s27, 1  ;;  %p296_p8 = scmp.lt.s32.totalorder %s2033_s27, 3 }
   0xc   : > { %p297_p9 = pnand %p1238_p7, %p296_p8 }
   0xd   : > { %s1240_s13 = sshll.u32 (!%p297_p9), %s2102_s28, 1  ;;  %v2035_v0 = vmov (!%p297_p9), 0.0|0.0   ;;  %vm2036_vm0 = vmmov (!%p297_p9), 0   ;;  %v2037_v1 = vmov (!%p297_p9), 0.0   ;;  %v2209_v50 = vld [vmem:[%s2426_s0] sm:$0xff] (!%p297_p9) }
   0xe   : > { %300 = sbr.rel (%p297_p9) target bundleno = 1471 (0x5bf), region = 48  ;;  %1735 = vmatprep.subr.bf16.mxu0 (!%p297_p9), %v2035_v0  ;;  %p354_p10 = scmp.lt.s32.totalorder (!%p297_p9), %s1240_s13, 3  ;;  %1487 = vmatprep.mubr.msk.f32.mxu0 (!%p297_p9), %vm2036_vm0, %v2037_v1 }
   0xf   : > { %1759 = vmatprep.subr.bf16.mxu1 (!%p297_p9), %v2035_v0  ;;  %1522 = vmatprep.mubr.msk.f32.mxu1 (!%p297_p9), %vm2036_vm0, %v2037_v1 }
  0x15   : > { %s2441_s13 = smov (!%p354_p10, %s1240_s13), 3 }
  0x16   : > { %s2139_s14 = sshll.u32 %s2441_s13, 7  ;;  %s2229_s8 = scalar_lea.vmem %s2428_s2, %s2441_s13 }
  0x17   : > { %s2145_s17 = scalar_lea.vmem %s2427_s1, %s2139_s14  ;;  %s2153_s20 = scalar_lea.vmem %s2429_s3, %s2139_s14  ;;  %v1252_v51 = vld [vmem:[%s2229_s8] ss:$0 sm:$0xff] }
  0x18   : > { %v391_v2 = vld [vmem:[%s2145_s17] sm:$0xff]  ;;  %v392_v3 = vld [vmem:[%s2145_s17 + $0x8] sm:$0xff]  ;;  %v393_v5 = vld [vmem:[%s2145_s17 + $0x10] sm:$0xff]  ;;  %s2238_s16 = scalar_lea.vmem %s2431_s5, %s2139_s14  ;;  %s2264_s19 = scalar_lea.vmem %s2430_s4, %s2441_s13 }
  0x19   : > { %v1736_v4 = vpack.c.bf16 %v392_v3, %v391_v2  ;;  %v394_v6 = vld [vmem:[%s2145_s17 + $0x18] sm:$0xff]  ;;  %v485_v7 = vld [vmem:[%s2153_s20] sm:$0xff]  ;;  %v486_v8 = vld [vmem:[%s2153_s20 + $0x8] sm:$0xff]  ;;  %s387_s22 = scalar_lea.vmem %s2432_s6, %s2441_s13 }
  0x1a   : > { %v2160_v9 = vpack.c.bf16 %v486_v8, %v485_v7  ;;  %v1739_v10 = vpack.c.bf16 %v394_v6, %v393_v5  ;;  %v487_v11 = vld [vmem:[%s2153_s20 + $0x10] sm:$0xff]  ;;  %v488_v12 = vld [vmem:[%s2153_s20 + $0x18] sm:$0xff]  ;;  %v395_v13 = vld [vmem:[%s2145_s17 + $0x20] sm:$0xff] }
  0x1b   : > { %1737 = vmatpush3.bf16.xpose.msra.mxu0 %v1736_v4  ;;  %v396_v14 = vld [vmem:[%s2145_s17 + $0x28] sm:$0xff]  ;;  %v2169_v15 = vpack.c.bf16 %v488_v12, %v487_v11  ;;  %v489_v17 = vld [vmem:[%s2153_s20 + $0x20] sm:$0xff]  ;;  %v397_v19 = vld [vmem:[%s2145_s17 + $0x30] sm:$0xff] }
  0x1c   : > { %1738 = vmatprep.subr.bf16.mxu0 %v2035_v0  ;;  %1761 = vmatpush3.bf16.xpose.msra.mxu1 %v2160_v9  ;;  %v1742_v16 = vpack.c.bf16 %v396_v14, %v395_v13  ;;  %v490_v18 = vld [vmem:[%s2153_s20 + $0x28] sm:$0xff]  ;;  %v398_v20 = vld [vmem:[%s2145_s17 + $0x38] sm:$0xff]  ;;  %v491_v23 = vld [vmem:[%s2153_s20 + $0x30] sm:$0xff] }
  0x1d   : > { %1762 = vmatprep.subr.bf16.mxu1 %v2035_v0  ;;  %v1766_v21 = vpack.c.bf16 %v490_v18, %v489_v17  ;;  %v1745_v22 = vpack.c.bf16 %v398_v20, %v397_v19  ;;  %v492_v24 = vld [vmem:[%s2153_s20 + $0x38] sm:$0xff]  ;;  %v399_v25 = vld [vmem:[%s2145_s17 + $0x40] sm:$0xff]  ;;  %v400_v26 = vld [vmem:[%s2145_s17 + $0x48] sm:$0xff] }
  0x1e   : > { %v1769_v27 = vpack.c.bf16 %v492_v24, %v491_v23  ;;  %v1748_v28 = vpack.c.bf16 %v400_v26, %v399_v25  ;;  %v493_v29 = vld [vmem:[%s2153_s20 + $0x40] sm:$0xff]  ;;  %v494_v30 = vld [vmem:[%s2153_s20 + $0x48] sm:$0xff]  ;;  %v401_v31 = vld [vmem:[%s2145_s17 + $0x50] sm:$0xff] }
  0x1f   : > { %v402_v32 = vld [vmem:[%s2145_s17 + $0x58] sm:$0xff]  ;;  %v1772_v33 = vpack.c.bf16 %v494_v30, %v493_v29  ;;  %v495_v35 = vld [vmem:[%s2153_s20 + $0x50] sm:$0xff]  ;;  %v403_v37 = vld [vmem:[%s2145_s17 + $0x60] sm:$0xff] }
  0x20   : > { %v1751_v34 = vpack.c.bf16 %v402_v32, %v401_v31  ;;  %v496_v36 = vld [vmem:[%s2153_s20 + $0x58] sm:$0xff]  ;;  %v404_v38 = vld [vmem:[%s2145_s17 + $0x68] sm:$0xff]  ;;  %v497_v41 = vld [vmem:[%s2153_s20 + $0x60] sm:$0xff] }
  0x21   : > { %v1775_v39 = vpack.c.bf16 %v496_v36, %v495_v35  ;;  %v1754_v40 = vpack.c.bf16 %v404_v38, %v403_v37  ;;  %v498_v42 = vld [vmem:[%s2153_s20 + $0x68] sm:$0xff]  ;;  %v405_v43 = vld [vmem:[%s2145_s17 + $0x70] sm:$0xff]  ;;  %v406_v44 = vld [vmem:[%s2145_s17 + $0x78] sm:$0xff] }
  0x22   : > { %v1778_v45 = vpack.c.bf16 %v498_v42, %v497_v41  ;;  %v1757_v46 = vpack.c.bf16 %v406_v44, %v405_v43  ;;  %v499_v47 = vld [vmem:[%s2153_s20 + $0x70] sm:$0xff]  ;;  %v500_v48 = vld [vmem:[%s2153_s20 + $0x78] sm:$0xff]  ;;  %v652_v56 = vld [vmem:[%s2238_s16] sm:$0xff] }
  0x23   : > { %1740 = vmatpush3.bf16.xpose.msra.mxu0 %v1739_v10  ;;  %v1781_v49 = vpack.c.bf16 %v500_v48, %v499_v47  ;;  %v653_v57 = vld [vmem:[%s2238_s16 + $0x8] sm:$0xff]  ;;  %v654_v59 = vld [vmem:[%s2238_s16 + $0x10] sm:$0xff]  ;;  %v655_v60 = vld [vmem:[%s2238_s16 + $0x18] sm:$0xff] }
  0x24   : > { %1741 = vmatprep.subr.bf16.mxu0 %v2035_v0  ;;  %1764 = vmatpush3.bf16.xpose.msra.mxu1 %v2169_v15  ;;  %v1808_v58 = vpack.c.bf16 %v653_v57, %v652_v56  ;;  %v1811_v61 = vpack.c.bf16 %v655_v60, %v654_v59  ;;  %v656_v62 = vld [vmem:[%s2238_s16 + $0x20] sm:$0xff]  ;;  %v657_v63 = vld [vmem:[%s2238_s16 + $0x28] sm:$0xff]  ;;  %v658_v3 = vld [vmem:[%s2238_s16 + $0x30] sm:$0xff] }
  0x25   : > { %1765 = vmatprep.subr.bf16.mxu1 %v2035_v0  ;;  %v1814_v2 = vpack.c.bf16 %v657_v63, %v656_v62  ;;  %v659_v4 = vld [vmem:[%s2238_s16 + $0x38] sm:$0xff]  ;;  %v660_v6 = vld [vmem:[%s2238_s16 + $0x40] sm:$0xff]  ;;  %v661_v7 = vld [vmem:[%s2238_s16 + $0x48] sm:$0xff] }
  0x26   : > { %v1817_v5 = vpack.c.bf16 %v659_v4, %v658_v3  ;;  %v1820_v8 = vpack.c.bf16 %v661_v7, %v660_v6  ;;  %v663_v10 = vld [vmem:[%s2238_s16 + $0x58] sm:$0xff]  ;;  %v664_v12 = vld [vmem:[%s2238_s16 + $0x60] sm:$0xff]  ;;  %v665_v13 = vld [vmem:[%s2238_s16 + $0x68] sm:$0xff] }
  0x27   : > { %v1826_v14 = vpack.c.bf16 %v665_v13, %v664_v12  ;;  %v2270_v17 = vld [vmem:[%s2264_s19] ss:$0 sm:$0xff]  ;;  %v1256_v23 = vld [vmem:[%s2145_s17 + $0x88] sm:$0xff]  ;;  %v1279_v57 = vld [vmem:[%s2153_s20 + $0xb0] sm:$0xff] }
  0x28   : > { %v1259_v30 = vld [vmem:[%s2145_s17 + $0xa0] sm:$0xff]  ;;  %v1260_v31 = vld [vmem:[%s2145_s17 + $0xa8] sm:$0xff]  ;;  %v1283_v63 = vld [vmem:[%s2153_s20 + $0xd0] sm:$0xff] }
  0x29   : > { %v1838_v32 = vpack.c.bf16 %v1260_v31, %v1259_v30  ;;  %v1263_v36 = vld [vmem:[%s2145_s17 + $0xc0] sm:$0xff]  ;;  %v1264_v37 = vld [vmem:[%s2145_s17 + $0xc8] sm:$0xff]  ;;  %v1287_v7 = vld [vmem:[%s2153_s20 + $0xf0] sm:$0xff] }
  0x2a   : > { %v1844_v38 = vpack.c.bf16 %v1264_v37, %v1263_v36  ;;  %v1267_v42 = vld [vmem:[%s2145_s17 + $0xe0] sm:$0xff]  ;;  %v1268_v43 = vld [vmem:[%s2145_s17 + $0xe8] sm:$0xff] }
  0x2b   : > { %1743 = vmatpush3.bf16.xpose.msra.mxu0 %v1742_v16  ;;  %v667_v16 = vld [vmem:[%s2238_s16 + $0x78] sm:$0xff]  ;;  %v1850_v44 = vpack.c.bf16 %v1268_v43, %v1267_v42  ;;  %v1273_v48 = vld [vmem:[%s2153_s20 + $0x80] sm:$0xff] }
  0x2c   : > { %1744 = vmatprep.subr.bf16.mxu0 %v2035_v0  ;;  %1767 = vmatpush3.bf16.xpose.msra.mxu1 %v1766_v21  ;;  %v1281_v60 = vld [vmem:[%s2153_s20 + $0xc0] sm:$0xff] }
  0x2d   : > { %1768 = vmatprep.subr.bf16.mxu1 %v2035_v0  ;;  %v1285_v4 = vld [vmem:[%s2153_s20 + $0xe0] sm:$0xff] }
  0x2e   : > { %v1299_v31 = vld [vmem:[%s2238_s16 + $0xc0] sm:$0xff] }
  0x2f   : > { %v1303_v37 = vld [vmem:[%s2238_s16 + $0xe0] sm:$0xff] }
  0x33   : > { %1746 = vmatpush3.bf16.xpose.msra.mxu0 %v1745_v22  ;;  %v1255_v22 = vld [vmem:[%s2145_s17 + $0x80] sm:$0xff] }
  0x34   : > { %1747 = vmatprep.subr.bf16.mxu0 %v2035_v0  ;;  %1770 = vmatpush3.bf16.xpose.msra.mxu1 %v1769_v27  ;;  %v1832_v25 = vpack.c.bf16 %v1256_v23, %v1255_v22  ;;  %v1293_v23 = vld [vmem:[%s2238_s16 + $0x90] sm:$0xff] }
  0x35   : > { %1771 = vmatprep.subr.bf16.mxu1 %v2035_v0 }
  0x3b   : > { %1749 = vmatpush3.bf16.xpose.msra.mxu0 %v1748_v28  ;;  %v1258_v28 = vld [vmem:[%s2145_s17 + $0x98] sm:$0xff] }
  0x3c   : > { %1750 = vmatprep.subr.bf16.mxu0 %v2035_v0  ;;  %1773 = vmatpush3.bf16.xpose.msra.mxu1 %v1772_v33 }
  0x3d   : > { %1774 = vmatprep.subr.bf16.mxu1 %v2035_v0 }
  0x43   : > { %1752 = vmatpush3.bf16.xpose.msra.mxu0 %v1751_v34  ;;  %v1262_v34 = vld [vmem:[%s2145_s17 + $0xb8] sm:$0xff] }
  0x44   : > { %1753 = vmatprep.subr.bf16.mxu0 %v2035_v0  ;;  %1776 = vmatpush3.bf16.xpose.msra.mxu1 %v1775_v39 }
  0x45   : > { %1777 = vmatprep.subr.bf16.mxu1 %v2035_v0 }
  0x4b   : > { %1755 = vmatpush3.bf16.xpose.msra.mxu0 %v1754_v40  ;;  %v1266_v40 = vld [vmem:[%s2145_s17 + $0xd8] sm:$0xff] }
  0x4c   : > { %1756 = vmatprep.subr.bf16.mxu0 %v2035_v0  ;;  %1779 = vmatpush3.bf16.xpose.msra.mxu1 %v1778_v45 }
  0x4d   : > { %1780 = vmatprep.subr.bf16.mxu1 %v2035_v0 }
  0x53   : > { %1758 = vmatpush3.bf16.xpose.msra.mxu0 %v1757_v46  ;;  %v1270_v46 = vld [vmem:[%s2145_s17 + $0xf8] sm:$0xff] }
  0x54   : > { %1783 = vmatprep.subr.bf16.mxu0 %v2035_v0  ;;  %1782 = vmatpush3.bf16.xpose.msra.mxu1 %v1781_v49 }
  0x55   : > { %1807 = vmatprep.subr.bf16.mxu1 %v2035_v0 }
  0x5a   : > { %1488 = vmatmul.mubr.f32.vlgmr.msra.gmra.mrb[0].mxu0 %v2209_v50 }
  0x5b   : > { %1785 = vmatpush3.bf16.xpose.msra.mxu0 %v2160_v9  ;;  %1557 = vmatprep.mubr.msk.f32.mxu0 %vm2036_vm0, %v2037_v1  ;;  %v662_v9 = vld [vmem:[%s2238_s16 + $0x50] sm:$0xff] }
  0x5c   : > { %1786 = vmatprep.subr.bf16.mxu0 %v2035_v0  ;;  %v1823_v11 = vpack.c.bf16 %v663_v10, %v662_v9 }
  0x63   : > { %1788 = vmatpush3.bf16.xpose.msra.mxu0 %v2169_v15  ;;  %v666_v15 = vld [vmem:[%s2238_s16 + $0x70] sm:$0xff] }
  0x64   : > { %1789 = vmatprep.subr.bf16.mxu0 %v2035_v0  ;;  %v1829_v18 = vpack.c.bf16 %v667_v16, %v666_v15  ;;  %v1272_v15 = vld [vmem:[%s2229_s8 + $0x1] ss:$0 sm:$0xff]  ;;  %s1318_s8 = sshll.u32 %s2102_s28, 8  ;;  %s2038_s28 = smov [#allocation2]  }
  0x6b   : > { %1791 = vmatpush3.bf16.xpose.msra.mxu0 %v1766_v21 }
  0x6c   : > { %1792 = vmatprep.subr.bf16.mxu0 %v2035_v0 }
  0x73   : > { %1794 = vmatpush3.bf16.xpose.msra.mxu0 %v1769_v27  ;;  %v1257_v27 = vld [vmem:[%s2145_s17 + $0x90] sm:$0xff] }
  0x74   : > { %1795 = vmatprep.subr.bf16.mxu0 %v2035_v0  ;;  %v1835_v29 = vpack.c.bf16 %v1258_v28, %v1257_v27  ;;  %v1297_v28 = vld [vmem:[%s2238_s16 + $0xb0] sm:$0xff] }
  0x7b   : > { %1797 = vmatpush3.bf16.xpose.msra.mxu0 %v1772_v33  ;;  %v1261_v33 = vld [vmem:[%s2145_s17 + $0xb0] sm:$0xff] }
  0x7c   : > { %1798 = vmatprep.subr.bf16.mxu0 %v2035_v0  ;;  %v1841_v35 = vpack.c.bf16 %v1262_v34, %v1261_v33  ;;  %v1301_v34 = vld [vmem:[%s2238_s16 + $0xd0] sm:$0xff] }
  0x83   : > { %1800 = vmatpush3.bf16.xpose.msra.mxu0 %v1775_v39  ;;  %v1265_v39 = vld [vmem:[%s2145_s17 + $0xd0] sm:$0xff] }
  0x84   : > { %1801 = vmatprep.subr.bf16.mxu0 %v2035_v0  ;;  %v1847_v41 = vpack.c.bf16 %v1266_v40, %v1265_v39  ;;  %v1254_v40 = vld [vmem:[%s387_s22] ss:$0 sm:$0xff] }
  0x8b   : > { %1803 = vmatpush3.bf16.xpose.msra.mxu0 %v1778_v45  ;;  %v1269_v45 = vld [vmem:[%s2145_s17 + $0xf0] sm:$0xff]  ;;  %s350_s17 = sand.u32 1, %s2025_s25  }
  0x8c   : > { %1804 = vmatprep.subr.bf16.mxu0 %v2035_v0  ;;  %v1853_v47 = vpack.c.bf16 %v1270_v46, %v1269_v45  ;;  %s1239_s23 = sshll.u32 %s350_s17, 4  ;;  %s2385_s14 = scalar_lea.sflag [#allocation3], %s350_s17 }
  0x8d   : > { %s352_s29 = scalar_lea.vmem [#allocation2], %s1239_s23 }
  0x8e   : > { %s1122_s13 = sshll.u32 %s352_s29, 4  ;;  %s2376_s13 = int_to_ptr.vmem [resolvable:$true] %s1122_s13 }
  0x8f   : > { %s1971_s18 = scalar_lea.vmem %s2376_s13, 256 }
  0x90   : > { %p1972_p11 = scmp.ne.s32.totalorder %s2376_s13, %s1971_s18 }
  0x92   : > { %p1973_p12 = pnand %p1972_p11, %p2119_p5 }
  0x93   : > { %1806 = vmatpush3.bf16.xpose.msra.mxu0 %v1781_v49  ;;  %v1274_v49 = vld [vmem:[%s2153_s20 + $0x88] sm:$0xff] }
  0x94   : > { %1831 = vmatprep.subr.bf16.mxu0 %v2035_v0  ;;  %p1974_p13 = pneg %p1973_p12 }
 0x12d   : > { %v480_v52 = vpop.f32.mrb[0].mxu0 }
 0x12e   : > { %v481_v53 = vadd.f32 %v1252_v51, %v480_v52  ;;  %v1489_v54 = vpop.f32.mrb[1].mxu0  ;;  %v1856_v51 = vpack.c.bf16 %v1274_v49, %v1273_v48  ;;  %v1275_v52 = vld [vmem:[%s2153_s20 + $0x90] sm:$0xff] }
 0x130   : > { %v484_v55 = vmax.f32 %v481_v53, 0.0  ;;  %v1276_v53 = vld [vmem:[%s2153_s20 + $0x98] sm:$0xff] }
 0x131   : > { %v1859_v54 = vpack.c.bf16 %v1276_v53, %v1275_v52  ;;  %v1306_v52 = vld [vmem:[%s2238_s16 + $0xf8] sm:$0xff] }
 0x132   : > { %1523 = vmatmul.mubr.f32.vlgmr.msra.gmra.mrb[0].mxu1 %v484_v55 }
 0x133   : > { %1592 = vmatprep.mubr.msk.f32.mxu1 %vm2036_vm0, %v2037_v1  ;;  %1809 = vmatpush3.bf16.xpose.msra.mxu1 %v1808_v58  ;;  %v1280_v58 = vld [vmem:[%s2153_s20 + $0xb8] sm:$0xff] }
 0x134   : > { %1810 = vmatprep.subr.bf16.mxu1 %v2035_v0  ;;  %v1865_v59 = vpack.c.bf16 %v1280_v58, %v1279_v57  ;;  %v1308_v57 = vld [vmem:[%s387_s22 + $0x1] ss:$0 sm:$0xff] }
 0x13b   : > { %1812 = vmatpush3.bf16.xpose.msra.mxu1 %v1811_v61  ;;  %v1282_v61 = vld [vmem:[%s2153_s20 + $0xc8] sm:$0xff] }
 0x13c   : > { %1813 = vmatprep.subr.bf16.mxu1 %v2035_v0  ;;  %v1868_v62 = vpack.c.bf16 %v1282_v61, %v1281_v60 }
 0x143   : > { %1815 = vmatpush3.bf16.xpose.msra.mxu1 %v1814_v2  ;;  %v1284_v2 = vld [vmem:[%s2153_s20 + $0xd8] sm:$0xff] }
 0x144   : > { %1816 = vmatprep.subr.bf16.mxu1 %v2035_v0  ;;  %v1871_v3 = vpack.c.bf16 %v1284_v2, %v1283_v63 }
 0x14b   : > { %1818 = vmatpush3.bf16.xpose.msra.mxu1 %v1817_v5  ;;  %v1286_v5 = vld [vmem:[%s2153_s20 + $0xe8] sm:$0xff] }
 0x14c   : > { %1819 = vmatprep.subr.bf16.mxu1 %v2035_v0  ;;  %v1874_v6 = vpack.c.bf16 %v1286_v5, %v1285_v4 }
 0x153   : > { %1821 = vmatpush3.bf16.xpose.msra.mxu1 %v1820_v8  ;;  %v1288_v8 = vld [vmem:[%s2153_s20 + $0xf8] sm:$0xff] }
 0x154   : > { %1822 = vmatprep.subr.bf16.mxu1 %v2035_v0  ;;  %v1877_v9 = vpack.c.bf16 %v1288_v8, %v1287_v7 }
 0x15b   : > { %1824 = vmatpush3.bf16.xpose.msra.mxu1 %v1823_v11 }
 0x15c   : > { %1825 = vmatprep.subr.bf16.mxu1 %v2035_v0 }
 0x163   : > { %1827 = vmatpush3.bf16.xpose.msra.mxu1 %v1826_v14 }
 0x164   : > { %1828 = vmatprep.subr.bf16.mxu1 %v2035_v0 }
 0x16b   : > { %1830 = vmatpush3.bf16.xpose.msra.mxu1 %v1829_v18 }
 0x16c   : > { %1855 = vmatprep.subr.bf16.mxu1 %v2035_v0 }
 0x205   : > { %v574_v19 = vpop.f32.mrb[0].mxu1 }
 0x206   : > { %v575_v20 = vadd.f32 %v2270_v17, %v574_v19  ;;  %v1524_v21 = vpop.f32.mrb[1].mxu1 }
 0x207   : > { %v1292_v21 = vld [vmem:[%s2238_s16 + $0x88] sm:$0xff] }
 0x208   : > { %v578_v24 = vmax.f32 %v575_v20, 0.0  ;;  %v1291_v20 = vld [vmem:[%s2238_s16 + $0x80] sm:$0xff] }
 0x209   : > { %v1904_v22 = vpack.c.bf16 %v1292_v21, %v1291_v20 }
 0x20a   : > { %v2276_v26 = vadd.f32 %v578_v24, %v484_v55  ;;  %v1278_v55 = vld [vmem:[%s2153_s20 + $0xa8] sm:$0xff]  ;;  %v1294_v24 = vld [vmem:[%s2238_s16 + $0x98] sm:$0xff] }
 0x20c   : > { %1558 = vmatmul.mubr.f32.vlgmr.msra.gmra.mrb[2].mxu0 %v2276_v26 }
 0x20d   : > { %1833 = vmatpush3.bf16.xpose.msra.mxu0 %v1832_v25  ;;  %1627 = vmatprep.mubr.msk.f32.mxu0 %vm2036_vm0, %v2037_v1  ;;  %v1907_v25 = vpack.c.bf16 %v1294_v24, %v1293_v23 }
 0x20e   : > { %1834 = vmatprep.subr.bf16.mxu0 %v2035_v0 }
 0x215   : > { %1836 = vmatpush3.bf16.xpose.msra.mxu0 %v1835_v29  ;;  %v1298_v29 = vld [vmem:[%s2238_s16 + $0xb8] sm:$0xff] }
 0x216   : > { %1837 = vmatprep.subr.bf16.mxu0 %v2035_v0  ;;  %v1913_v30 = vpack.c.bf16 %v1298_v29, %v1297_v28 }
 0x21d   : > { %1839 = vmatpush3.bf16.xpose.msra.mxu0 %v1838_v32  ;;  %v1300_v32 = vld [vmem:[%s2238_s16 + $0xc8] sm:$0xff] }
 0x21e   : > { %1840 = vmatprep.subr.bf16.mxu0 %v2035_v0  ;;  %v1916_v33 = vpack.c.bf16 %v1300_v32, %v1299_v31 }
 0x225   : > { %1842 = vmatpush3.bf16.xpose.msra.mxu0 %v1841_v35  ;;  %v1302_v35 = vld [vmem:[%s2238_s16 + $0xd8] sm:$0xff] }
 0x226   : > { %1843 = vmatprep.subr.bf16.mxu0 %v2035_v0  ;;  %v1919_v36 = vpack.c.bf16 %v1302_v35, %v1301_v34 }
 0x22d   : > { %1845 = vmatpush3.bf16.xpose.msra.mxu0 %v1844_v38  ;;  %v1304_v38 = vld [vmem:[%s2238_s16 + $0xe8] sm:$0xff] }
 0x22e   : > { %1846 = vmatprep.subr.bf16.mxu0 %v2035_v0  ;;  %v1922_v39 = vpack.c.bf16 %v1304_v38, %v1303_v37 }
 0x235   : > { %1848 = vmatpush3.bf16.xpose.msra.mxu0 %v1847_v41 }
 0x236   : > { %1849 = vmatprep.subr.bf16.mxu0 %v2035_v0 }
 0x23d   : > { %1851 = vmatpush3.bf16.xpose.msra.mxu0 %v1850_v44  ;;  %v1290_v44 = vld [vmem:[%s2264_s19 + $0x1] ss:$0 sm:$0xff]  ;;  %s1975_s19 = sshll.u32 %s2038_s28, 4  ;;  %s1976_s19 = int_to_ptr.vmem [resolvable:$false] %s1975_s19 }
 0x23e   : > { %1852 = vmatprep.subr.bf16.mxu0 %v2035_v0  ;;  %p1978_p0 = scmp.lt.s32.totalorder %s2376_s13, %s1976_s19 }
 0x245   : > { %1854 = vmatpush3.bf16.xpose.msra.mxu0 %v1853_v47 }
 0x246   : > { %1879 = vmatprep.subr.bf16.mxu0 %v2035_v0 }
 0x24c   : > { %1628 = vmatmul.mubr.f32.vlgmr.msra.gmra.mrb[4].mxu0 %v2209_v50  ;;  %v1277_v50 = vld [vmem:[%s2153_s20 + $0xa0] sm:$0xff]  ;;  %s1977_s20 = scalar_lea.vmem %s1976_s19, 512 }
 0x24d   : > { %1697 = vmatprep.mubr.msk.f32.mxu0 %vm2036_vm0, %v2037_v1  ;;  %1881 = vmatpush3.bf16.xpose.msra.mxu0 %v1856_v51  ;;  %v1862_v56 = vpack.c.bf16 %v1278_v55, %v1277_v50  ;;  %p1979_p1 = scmp.lt.s32.totalorder %s1977_s20, %s1971_s18 }
 0x24e   : > { %1882 = vmatprep.subr.bf16.mxu0 %v2035_v0 }
 0x24f   : > { %p1980_p2 = por %p1979_p1, %p1978_p0 }
 0x251   : > { %p1981_p3 = pnand %p1980_p2, %p1974_p13 }
 0x255   : > { %1884 = vmatpush3.bf16.xpose.msra.mxu0 %v1859_v54 }
 0x256   : > { %1885 = vmatprep.subr.bf16.mxu0 %v2035_v0 }
 0x25d   : > { %1887 = vmatpush3.bf16.xpose.msra.mxu0 %v1862_v56 }
 0x25e   : > { %1888 = vmatprep.subr.bf16.mxu0 %v2035_v0 }
 0x265   : > { %1890 = vmatpush3.bf16.xpose.msra.mxu0 %v1865_v59 }
 0x266   : > { %1891 = vmatprep.subr.bf16.mxu0 %v2035_v0 }
 0x26d   : > { %1893 = vmatpush3.bf16.xpose.msra.mxu0 %v1868_v62 }
 0x26e   : > { %1894 = vmatprep.subr.bf16.mxu0 %v2035_v0 }
 0x275   : > { %1896 = vmatpush3.bf16.xpose.msra.mxu0 %v1871_v3 }
 0x276   : > { %1897 = vmatprep.subr.bf16.mxu0 %v2035_v0 }
 0x27d   : > { %1899 = vmatpush3.bf16.xpose.msra.mxu0 %v1874_v6 }
 0x27e   : > { %1900 = vmatprep.subr.bf16.mxu0 %v2035_v0 }
 0x285   : > { %1902 = vmatpush3.bf16.xpose.msra.mxu0 %v1877_v9 }
 0x2df   : > { %v646_v10 = vpop.f32.mrb[2].mxu0 }
 0x2e0   : > { %v647_v11 = vadd.f32 %v2270_v17, %v646_v10  ;;  %v1559_v12 = vpop.f32.mrb[3].mxu0 }
 0x2e2   : > { %v650_v13 = vmax.f32 %v647_v11, 0.0 }
 0x2e4   : > { %v651_v14 = vadd.f32 %v650_v13, %v2276_v26  ;;  %v1295_v26 = vld [vmem:[%s2238_s16 + $0xa0] sm:$0xff] }
 0x2e6   : > { %1593 = vmatmul.mubr.f32.vlgmr.msra.gmra.mrb[2].mxu1 %v651_v14 }
 0x2e7   : > { %1857 = vmatpush3.bf16.xpose.msra.mxu1 %v1856_v51  ;;  %1662 = vmatprep.mubr.msk.f32.mxu1 %vm2036_vm0, %v2037_v1  ;;  %v1305_v51 = vld [vmem:[%s2238_s16 + $0xf0] sm:$0xff] }
 0x2e8   : > { %1858 = vmatprep.subr.bf16.mxu1 %v2035_v0 }
 0x2ef   : > { %1860 = vmatpush3.bf16.xpose.msra.mxu1 %v1859_v54 }
 0x2f0   : > { %1861 = vmatprep.subr.bf16.mxu1 %v2035_v0 }
 0x2f7   : > { %1863 = vmatpush3.bf16.xpose.msra.mxu1 %v1862_v56 }
 0x2f8   : > { %1864 = vmatprep.subr.bf16.mxu1 %v2035_v0 }
 0x2ff   : > { %1866 = vmatpush3.bf16.xpose.msra.mxu1 %v1865_v59 }
 0x300   : > { %1867 = vmatprep.subr.bf16.mxu1 %v2035_v0 }
 0x307   : > { %1869 = vmatpush3.bf16.xpose.msra.mxu1 %v1868_v62 }
 0x308   : > { %1870 = vmatprep.subr.bf16.mxu1 %v2035_v0 }
 0x30f   : > { %1872 = vmatpush3.bf16.xpose.msra.mxu1 %v1871_v3 }
 0x310   : > { %1873 = vmatprep.subr.bf16.mxu1 %v2035_v0 }
 0x317   : > { %1875 = vmatpush3.bf16.xpose.msra.mxu1 %v1874_v6 }
 0x318   : > { %1876 = vmatprep.subr.bf16.mxu1 %v2035_v0 }
 0x31f   : > { %1878 = vmatpush3.bf16.xpose.msra.mxu1 %v1877_v9  ;;  %v837_v16 = vpop.f32.mrb[4].mxu0 }
 0x320   : > { %v838_v17 = vadd.f32 %v1272_v15, %v837_v16  ;;  %v1629_v18 = vpop.f32.mrb[5].mxu0  ;;  %1903 = vmatprep.subr.bf16.mxu1 %v2035_v0 }
 0x322   : > { %v841_v19 = vmax.f32 %v838_v17, 0.0 }
 0x326   : > { %1663 = vmatmul.mubr.f32.vlgmr.msra.gmra.mrb[4].mxu1 %v841_v19 }
 0x327   : > { %1732 = vmatprep.mubr.msk.f32.mxu1 %vm2036_vm0, %v2037_v1  ;;  %1905 = vmatpush3.bf16.xpose.msra.mxu1 %v1904_v22  ;;  %v1296_v1 = vld [vmem:[%s2238_s16 + $0xa8] sm:$0xff]  ;;  %s2381_s16 = scalar_lea.hbm %s2433_s7, %s1318_s8 }
 0x328   : > { %1906 = vmatprep.subr.bf16.mxu1 %v2035_v0  ;;  %v1910_v27 = vpack.c.bf16 %v1296_v1, %v1295_v26 }
 0x32f   : > { %1908 = vmatpush3.bf16.xpose.msra.mxu1 %v1907_v25 }
 0x330   : > { %1909 = vmatprep.subr.bf16.mxu1 %v2035_v0 }
 0x337   : > { %1911 = vmatpush3.bf16.xpose.msra.mxu1 %v1910_v27 }
 0x338   : > { %1912 = vmatprep.subr.bf16.mxu1 %v2035_v0 }
 0x33f   : > { %1914 = vmatpush3.bf16.xpose.msra.mxu1 %v1913_v30 }
 0x340   : > { %1915 = vmatprep.subr.bf16.mxu1 %v2035_v0 }
 0x347   : > { %1917 = vmatpush3.bf16.xpose.msra.mxu1 %v1916_v33 }
 0x348   : > { %1918 = vmatprep.subr.bf16.mxu1 %v2035_v0 }
 0x34f   : > { %1920 = vmatpush3.bf16.xpose.msra.mxu1 %v1919_v36 }
 0x350   : > { %1921 = vmatprep.subr.bf16.mxu1 %v2035_v0 }
 0x357   : > { %1923 = vmatpush3.bf16.xpose.msra.mxu1 %v1922_v39 }
 0x358   : > { %1924 = vmatprep.subr.bf16.mxu1 %v2035_v0  ;;  %v1925_v0 = vpack.c.bf16 %v1306_v52, %v1305_v51 }
 0x35f   : > { %1926 = vmatpush3.bf16.xpose.msra.mxu1 %v1925_v0 }
 0x3b9   : > { %v741_v41 = vpop.f32.mrb[2].mxu1 }
 0x3ba   : > { %v742_v42 = vadd.f32 %v1254_v40, %v741_v41  ;;  %v1594_v43 = vpop.f32.mrb[3].mxu1 }
 0x3bc   : > { %745 = vst [vmem:[%s352_s29] sm:$0xff] %v742_v42 }
 0x3f9   : > { %v933_v45 = vpop.f32.mrb[4].mxu1 }
 0x3fa   : > { %v934_v46 = vadd.f32 %v1290_v44, %v933_v45  ;;  %v1664_v47 = vpop.f32.mrb[5].mxu1 }
 0x3fc   : > { %v937_v48 = vmax.f32 %v934_v46, 0.0 }
 0x3fe   : > { %v938_v49 = vadd.f32 %v937_v48, %v841_v19 }
 0x400   : > { %1698 = vmatmul.mubr.f32.vlgmr.msra.gmra.mrb[6].mxu0 %v938_v49 }
 0x4d3   : > { %v1005_v53 = vpop.f32.mrb[6].mxu0 }
 0x4d4   : > { %v1006_v54 = vadd.f32 %v1290_v44, %v1005_v53  ;;  %v1699_v50 = vpop.f32.mrb[7].mxu0 }
 0x4d6   : > { %v1009_v55 = vmax.f32 %v1006_v54, 0.0 }
 0x4d8   : > { %v1010_v56 = vadd.f32 %v1009_v55, %v938_v49 }
 0x4da   : > { %1733 = vmatmul.mubr.f32.vlgmr.msra.gmra.mrb[6].mxu1 %v1010_v56 }
 0x5ad   : > { %v1102_v58 = vpop.f32.mrb[6].mxu1 }
 0x5ae   : > { %v1103_v59 = vadd.f32 %v1308_v57, %v1102_v58  ;;  %v1734_v60 = vpop.f32.mrb[7].mxu1 }
 0x5b0   : > { %1309 = vst [vmem:[%s352_s29 + $0x8] sm:$0xff] %v1103_v59 }
 0x5b1   : > { %1984 = shalt.err (!%p1981_p3)
}
 0x5b2   : > { %s1985_s17 = scalar_lea.hbm %s2381_s16, 256  ;;  %s1989_s23 = scalar_lea.hbm %s2433_s7, 512 }
 0x5b3   : > { %p1986_p4 = scmp.ne.s32.totalorder %s2381_s16, %s1985_s17  ;;  %p1990_p9 = scmp.lt.u32.totalorder %s2381_s16, %s2433_s7 }
 0x5b4   : > { %p1991_p10 = scmp.lt.u32.totalorder %s1989_s23, %s1985_s17  ;;  %p1993_p12 = scmp.lt.u32.totalorder %s1985_s17, %s2381_s16 }
 0x5b5   : > { %p1987_p7 = pnand %p1986_p4, %p2119_p5 }
 0x5b6   : > { %p1992_p11 = por %p1991_p10, %p1990_p9 }
 0x5b7   : > { %p1988_p8 = pneg %p1987_p7 }
 0x5b8   : > { %p1994_p13 = por %p1993_p12, %p1992_p11 }
 0x5ba   : > { %p1995_p0 = pnand %p1994_p13, %p1988_p8 }
 0x5bc   : > { %1998 = shalt.err (!%p1995_p0)
}
 0x5bd   : > { %s2039_s9 = smov 128   ;;  %s2040_s15 = smov 8  }
 0x5be   : > { %1927 = dma.vmem_to_hbm [thread:$0]  (%p2119_p5), %s2376_s13, 256, %s2381_s16, %s2385_s14, %s2039_s9, %s2039_s9, %s2040_s15  }
 0x5bf PF: > { %p1933_p1 = scmp.ge.s32.totalorder %s2033_s27, 2  ;;  %s1137_s18 = sand.u32 1, %s2021_s24  }
 0x5c0   : > { %s1138_s28 = scalar_lea.sflag [#allocation3], %s1137_s18 }
 0x5c1   : > { %p1930_p2 = pnand %p1933_p1, %p2123_p6 }
 0x5c3   : > { %2016 = dma.done.wait (!%p1930_p2), %s1138_s28, 256  }
 0x5c4   : > { %2018 = vsyncadd (!%p1930_p2), %s1138_s28, 4294967040  ;;  %p17_p3 = scmp.ge.s32.totalorder %s2106_s30, 4   ;;  %s2436_s24 = smov %s2025_s25 }
 0x5c5   : > { %s2437_s25 = smov %s2029_s26  ;;  %s2438_s26 = smov %s2117_s10 }
 0x5c6   : > { %s2439_s27 = smov %s2106_s30  ;;  %19 = sbr.rel (!%p17_p3) target bundleno = 3 (0x3), region = 105 }
 0x5cd   :  { %1143 = vsyncpa [#allocation3], 1 }
 0x5ce   :  { %1145 = vsyncpa [#allocation3 + $0x1], 1 }

</bundles_post_ra>
